<compile_context>
chip_gen: v7x
topology: tpu7x:2x2x1
jax: 0.10.0
libtpu: 0.0.40
codegen_flags: <defaults>
</compile_context>

<pallas_src>
import jax
import jax.numpy as jnp
from jax.experimental import pallas as pl
from jax.experimental.pallas import tpu as pltpu

_NEG_LARGE = -1e30  # finite "minus infinity" so padded/masked lanes can never produce NaN


def _round_up(x, m):
    return ((x + m - 1) // m) * m


def _top2_and_softmax(logits):
    """Top-2 over the lane axis (lowest-index tie-break, matching lax.top_k / torch.topk)
    followed by a softmax over the two selected logits."""
    t, e = logits.shape
    lane_iota = jax.lax.broadcasted_iota(jnp.int32, (t, e), 1)

    max1 = jnp.max(logits, axis=-1, keepdims=True)                       # (t, 1)
    idx1 = jnp.min(jnp.where(logits == max1, lane_iota, e),
                   axis=-1, keepdims=True)                               # (t, 1)

    masked = jnp.where(lane_iota == idx1, _NEG_LARGE, logits)
    max2 = jnp.max(masked, axis=-1, keepdims=True)                       # (t, 1)
    idx2 = jnp.min(jnp.where(masked == max2, lane_iota, e),
                   axis=-1, keepdims=True)                               # (t, 1)

    # softmax over [max1, max2] with max1 >= max2 (numerically safe: exponent <= 0)
    e2 = jnp.exp(max2 - max1)
    inv = 1.0 / (1.0 + e2)
    s1 = inv
    s2 = e2 * inv

    idx = jnp.concatenate([idx1, idx2], axis=-1)                         # (t, 2) fused store
    score = jnp.concatenate([s1, s2], axis=-1)                           # (t, 2) fused store
    return idx, score


def _naive_gate_kernel(x_ref, w_ref, b_ref, idx_ref, score_ref):
    logits = jnp.dot(x_ref[...], w_ref[...],
                     preferred_element_type=jnp.float32) + b_ref[...]
    idx, score = _top2_and_softmax(logits)
    idx_ref[...] = idx
    score_ref[...] = score


def _naive_gate_kernel_with_logits(x_ref, w_ref, b_ref, logits_ref, idx_ref, score_ref):
    logits = jnp.dot(x_ref[...], w_ref[...],
                     preferred_element_type=jnp.float32) + b_ref[...]
    logits_ref[...] = logits
    idx, score = _top2_and_softmax(logits)
    idx_ref[...] = idx
    score_ref[...] = score


def naive_gate_forward(inp, weight, bias, top_k=2, return_all_scores=False,
                       matmul_dtype=None):
    """inp: (..., d_model); weight: (tot_expert, d_model) [torch layout]; bias: (tot_expert,).

    matmul_dtype: None/jnp.float32 for exact f32 matmul, jnp.bfloat16 to halve x/W HBM traffic
    and use the bf16-native MXU (accumulation stays f32).
    """
    assert top_k == 2, "kernel implements the default top_k=2"
    d_model = inp.shape[-1]
    tot_expert = weight.shape[0]
    assert tot_expert >= 2, "top-2 gating requires at least 2 experts"

    x_dtype = jnp.float32 if matmul_dtype is None else matmul_dtype
    x2d = inp.reshape(-1, d_model).astype(x_dtype)
    T = x2d.shape[0]

    w = jnp.transpose(weight).astype(x_dtype)                  # (d_model, tot_expert)
    b = bias.astype(jnp.float32)                               # (tot_expert,)

    # --- pad expert dim to a lane-dense multiple of 128 ---
    e_pad = max(128, _round_up(tot_expert, 128))
    if e_pad != tot_expert:
        w = jnp.pad(w, ((0, 0), (0, e_pad - tot_expert)))
        b = jnp.pad(b, (0, e_pad - tot_expert), constant_values=_NEG_LARGE)
    b = b.reshape(1, e_pad)

    # --- choose token tile from a VMEM budget (keeps v7x's 64 MiB physical VMEM happy) ---
    bytes_x = jnp.dtype(x_dtype).itemsize
    budget = 24 * 1024 * 1024
    t_cap = min(_round_up(T, 8), 1024)

    def _tile_cost(t):
        cost = 2 * t * d_model * bytes_x                       # double-buffered x tile
        cost += 2 * (d_model * e_pad * bytes_x + e_pad * 4)    # resident weight + bias
        cost += 2 * t * 2 * (4 + 4)                            # idx + score (double-buffered)
        if return_all_scores:
            cost += 2 * t * e_pad * 4                          # logits writeback buffer
        return cost

    tile_t = 8
    while tile_t * 2 <= t_cap and _tile_cost(tile_t * 2) <= budget:
        tile_t *= 2

    t_pad = _round_up(T, tile_t)
    if t_pad != T:
        x2d = jnp.pad(x2d, ((0, t_pad - T), (0, 0)))           # zero rows -> logits = bias, no NaN
    num_tiles = t_pad // tile_t

    in_specs = [
        pl.BlockSpec((tile_t, d_model), lambda i: (i, 0)),     # streamed x tiles
        pl.BlockSpec((d_model, e_pad), lambda i: (0, 0)),      # VMEM-resident weight
        pl.BlockSpec((1, e_pad), lambda i: (0, 0)),            # VMEM-resident bias
    ]
    idx_spec = pl.BlockSpec((tile_t, 2), lambda i: (i, 0))
    score_spec = pl.BlockSpec((tile_t, 2), lambda i: (i, 0))

    compiler_params = pltpu.CompilerParams(
        dimension_semantics=("parallel",),                     # shard tokens across TCs (v7x)
        vmem_limit_bytes=40 * 1024 * 1024,                     # headroom over budget; > v5e's 16 MiB default
    )

    if return_all_scores:
        out_shapes = (
            jax.ShapeDtypeStruct((t_pad, e_pad), jnp.float32),
            jax.ShapeDtypeStruct((t_pad, 2), jnp.int32),
            jax.ShapeDtypeStruct((t_pad, 2), jnp.float32),
        )
        out_specs = (pl.BlockSpec((tile_t, e_pad), lambda i: (i, 0)), idx_spec, score_spec)
        logits, idx, score = pl.pallas_call(
            _naive_gate_kernel_with_logits,
            grid=(num_tiles,),
            in_specs=in_specs,
            out_specs=out_specs,
            out_shape=out_shapes,
            compiler_params=compiler_params,
        )(x2d, w, b)
        return idx[:T], score[:T], logits[:T, :tot_expert]

    out_shapes = (
        jax.ShapeDtypeStruct((t_pad, 2), jnp.int32),
        jax.ShapeDtypeStruct((t_pad, 2), jnp.float32),
    )
    idx, score = pl.pallas_call(
        _naive_gate_kernel,
        grid=(num_tiles,),
        in_specs=in_specs,
        out_specs=(idx_spec, score_spec),
        out_shape=out_shapes,
        compiler_params=compiler_params,
    )(x2d, w, b)
    return idx[:T], score[:T]


if __name__ == "__main__":
    # Small shapes consistent with the module: d_model=32, num_expert=4, world_size=2 -> tot_expert=8
    d_model, num_expert, world_size, top_k = 32, 4, 2, 2
    tot_expert = num_expert * world_size
    batch, seq = 2, 4   # -> 8 tokens

    key = jax.random.PRNGKey(0)
    k_x, k_w, k_b = jax.random.split(key, 3)
    inp = jax.random.normal(k_x, (batch, seq, d_model), dtype=jnp.float32)
    # deterministic Linear(d_model, tot_expert) params (torch layout: (out, in))
    weight = jax.random.normal(k_w, (tot_expert, d_model), dtype=jnp.float32) * 0.1
    bias = jax.random.normal(k_b, (tot_expert,), dtype=jnp.float32) * 0.1

    # f32 path with full logits
    idx, score, logits = naive_gate_forward(inp, weight, bias,
                                            top_k=top_k, return_all_scores=True)
    # f32 path without the logits writeback (the common case)
    idx2, score2 = naive_gate_forward(inp, weight, bias, top_k=top_k,
                                      return_all_scores=False)
    jax.block_until_ready((idx, score, logits, idx2, score2))

    # Pure-JAX reference check
    x2d = inp.reshape(-1, d_model)
    ref_logits = x2d @ weight.T + bias
    ref_val, ref_idx = jax.lax.top_k(ref_logits, top_k)
    ref_score = jax.nn.softmax(ref_val, axis=-1)
    assert jnp.allclose(logits, ref_logits, atol=1e-4), "logits mismatch"
    assert jnp.array_equal(idx, ref_idx), "top-k indices mismatch"
    assert jnp.allclose(score, ref_score, atol=1e-5), "top-k scores mismatch"
    assert jnp.array_equal(idx2, ref_idx), "top-k indices mismatch (no-logits path)"
    assert jnp.allclose(score2, ref_score, atol=1e-5), "top-k scores mismatch (no-logits path)"

    # bf16-matmul path (perf option for v5e/v6e/v7x) — just exercise that it runs.
    idx_bf, score_bf = naive_gate_forward(inp, weight, bias, top_k=top_k,
                                          return_all_scores=False,
                                          matmul_dtype=jnp.bfloat16)
    jax.block_until_ready((idx_bf, score_bf))
    assert idx_bf.shape == ref_idx.shape and score_bf.shape == ref_score.shape

    # TODO(synk): BaseGate.set_loss/get_loss bookkeeping is host-side module state, not a kernel op.
    print("KERNEL_OK")
</pallas_src>

<mosaic_0001>
module attributes {stable_mosaic.version = 11 : i64} {
  func.func @_naive_gate_kernel_with_logits(%arg0: i32, %arg1: memref<8x32xf32, #tpu.memory_space<vmem>>, %arg2: memref<32x128xf32, #tpu.memory_space<vmem>>, %arg3: memref<1x128xf32, #tpu.memory_space<vmem>>, %arg4: memref<8x128xf32, #tpu.memory_space<vmem>>, %arg5: memref<8x2xi32, #tpu.memory_space<vmem>>, %arg6: memref<8x2xf32, #tpu.memory_space<vmem>>) attributes {dimension_semantics = [#tpu.dimension_semantics<parallel>], iteration_bounds = array<i64: 1>, scalar_prefetch = 0 : i64, scratch_operands = 0 : i64, tpu.core_type = #tpu.core_type<tc>, window_params = [{transform_indices = @transform_0, window_bounds = array<i64: 8, 32>}, {pipeline_mode = #tpu.pipeline_mode<synchronous>, transform_indices = @transform_1, window_bounds = array<i64: 32, 128>}, {pipeline_mode = #tpu.pipeline_mode<synchronous>, transform_indices = @transform_2, window_bounds = array<i64: 1, 128>}, {transform_indices = @transform_3, window_bounds = array<i64: 8, 128>}, {transform_indices = @transform_4, window_bounds = array<i64: 8, 2>}, {transform_indices = @transform_5, window_bounds = array<i64: 8, 2>}]} {
    %c0 = arith.constant 0 : index
    %c0_0 = arith.constant 0 : index
    %0 = vector.load %arg1[%c0, %c0_0] : memref<8x32xf32, #tpu.memory_space<vmem>>, vector<8x32xf32>
    %c0_1 = arith.constant 0 : index
    %c0_2 = arith.constant 0 : index
    %1 = vector.load %arg2[%c0_1, %c0_2] : memref<32x128xf32, #tpu.memory_space<vmem>>, vector<32x128xf32>
    %cst = arith.constant dense<0.000000e+00> : vector<8x128xf32>
    %2 = tpu.matmul %0, %1, %cst {dimension_numbers = #tpu.dot_dimension_numbers<[1], [0], [0], [1], [0, 0, 1, 1], [], []>} : vector<8x32xf32>, vector<32x128xf32>, vector<8x128xf32> -> vector<8x128xf32>
    %c0_3 = arith.constant 0 : index
    %c0_4 = arith.constant 0 : index
    %3 = vector.load %arg3[%c0_3, %c0_4] : memref<1x128xf32, #tpu.memory_space<vmem>>, vector<1x128xf32>
    %4 = vector.broadcast %3 : vector<1x128xf32> to vector<8x128xf32>
    %5 = arith.addf %2, %4 : vector<8x128xf32>
    %c0_5 = arith.constant 0 : index
    %c0_6 = arith.constant 0 : index
    %6 = vector.load %arg4[%c0_5, %c0_6] : memref<8x128xf32, #tpu.memory_space<vmem>>, vector<8x128xf32>
    tpu.vector_store %arg4[%c0_5, %c0_6], %5 {strides = array<i32>} : memref<8x128xf32, #tpu.memory_space<vmem>>, vector<8x128xf32>,
    %7 = tpu.iota {dimensions = array<i32: 1>} : vector<8x128xi32>
    %cst_7 = arith.constant dense<0xFF800000> : vector<8xf32>
    %8 = vector.multi_reduction <maximumf>, %5, %cst_7 [1] : vector<8x128xf32> to vector<8xf32>
    %9 = vector.shape_cast %8 : vector<8xf32> to vector<8x1xf32>
    %10 = vector.broadcast %9 : vector<8x1xf32> to vector<8x128xf32>
    %11 = arith.cmpf oeq, %5, %10 : vector<8x128xf32>
    %c128_i32 = arith.constant 128 : i32
    %12 = vector.broadcast %c128_i32 : i32 to vector<8x128xi32>
    %13 = arith.select %11, %7, %12 : vector<8x128xi1>, vector<8x128xi32>
    %cst_8 = arith.constant dense<2147483647> : vector<8xi32>
    %14 = vector.multi_reduction <minsi>, %13, %cst_8 [1] : vector<8x128xi32> to vector<8xi32>
    %15 = vector.shape_cast %14 : vector<8xi32> to vector<8x1xi32>
    %16 = vector.broadcast %15 : vector<8x1xi32> to vector<8x128xi32>
    %17 = arith.cmpi eq, %7, %16 : vector<8x128xi32>
    %cst_9 = arith.constant -1.000000e+30 : f32
    %18 = vector.broadcast %cst_9 : f32 to vector<8x128xf32>
    %19 = arith.select %17, %18, %5 : vector<8x128xi1>, vector<8x128xf32>
    %cst_10 = arith.constant dense<0xFF800000> : vector<8xf32>
    %20 = vector.multi_reduction <maximumf>, %19, %cst_10 [1] : vector<8x128xf32> to vector<8xf32>
    %21 = vector.shape_cast %20 : vector<8xf32> to vector<8x1xf32>
    %22 = vector.broadcast %21 : vector<8x1xf32> to vector<8x128xf32>
    %23 = arith.cmpf oeq, %19, %22 : vector<8x128xf32>
    %c128_i32_11 = arith.constant 128 : i32
    %24 = vector.broadcast %c128_i32_11 : i32 to vector<8x128xi32>
    %25 = arith.select %23, %7, %24 : vector<8x128xi1>, vector<8x128xi32>
    %cst_12 = arith.constant dense<2147483647> : vector<8xi32>
    %26 = vector.multi_reduction <minsi>, %25, %cst_12 [1] : vector<8x128xi32> to vector<8xi32>
    %27 = vector.shape_cast %26 : vector<8xi32> to vector<8x1xi32>
    %28 = arith.subf %21, %9 : vector<8x1xf32>
    %29 = math.exp %28 : vector<8x1xf32>
    %cst_13 = arith.constant 1.000000e+00 : f32
    %30 = vector.broadcast %cst_13 : f32 to vector<8x1xf32>
    %31 = arith.addf %30, %29 : vector<8x1xf32>
    %cst_14 = arith.constant 1.000000e+00 : f32
    %32 = vector.broadcast %cst_14 : f32 to vector<8x1xf32>
    %33 = arith.divf %32, %31 : vector<8x1xf32>
    %34 = arith.mulf %29, %33 : vector<8x1xf32>
    %35 = tpu.concatenate %15, %27 in 1 : vector<8x1xi32>, vector<8x1xi32> -> vector<8x2xi32>
    %36 = tpu.concatenate %33, %34 in 1 : vector<8x1xf32>, vector<8x1xf32> -> vector<8x2xf32>
    %c0_15 = arith.constant 0 : index
    %c0_16 = arith.constant 0 : index
    %37 = vector.load %arg5[%c0_15, %c0_16] : memref<8x2xi32, #tpu.memory_space<vmem>>, vector<8x2xi32>
    tpu.vector_store %arg5[%c0_15, %c0_16], %35 {strides = array<i32>} : memref<8x2xi32, #tpu.memory_space<vmem>>, vector<8x2xi32>,
    %c0_17 = arith.constant 0 : index
    %c0_18 = arith.constant 0 : index
    %38 = vector.load %arg6[%c0_17, %c0_18] : memref<8x2xf32, #tpu.memory_space<vmem>>, vector<8x2xf32>
    tpu.vector_store %arg6[%c0_17, %c0_18], %36 {strides = array<i32>} : memref<8x2xf32, #tpu.memory_space<vmem>>, vector<8x2xf32>,
    return
  }
  func.func @transform_0(%arg0: i32) -> (i32, i32) {
    %c0_i32 = arith.constant 0 : i32
    %c0_i32_0 = arith.constant 0 : i32
    return %arg0, %c0_i32 : i32, i32
  }
  func.func @transform_1(%arg0: i32) -> (i32, i32) {
    %c0_i32 = arith.constant 0 : i32
    %c0_i32_0 = arith.constant 0 : i32
    %c0_i32_1 = arith.constant 0 : i32
    return %c0_i32, %c0_i32_0 : i32, i32
  }
  func.func @transform_2(%arg0: i32) -> (i32, i32) {
    %c0_i32 = arith.constant 0 : i32
    %c0_i32_0 = arith.constant 0 : i32
    %c0_i32_1 = arith.constant 0 : i32
    return %c0_i32, %c0_i32_0 : i32, i32
  }
  func.func @transform_3(%arg0: i32) -> (i32, i32) {
    %c0_i32 = arith.constant 0 : i32
    %c0_i32_0 = arith.constant 0 : i32
    return %arg0, %c0_i32 : i32, i32
  }
  func.func @transform_4(%arg0: i32) -> (i32, i32) {
    %c0_i32 = arith.constant 0 : i32
    %c0_i32_0 = arith.constant 0 : i32
    return %arg0, %c0_i32 : i32, i32
  }
  func.func @transform_5(%arg0: i32) -> (i32, i32) {
    %c0_i32 = arith.constant 0 : i32
    %c0_i32_0 = arith.constant 0 : i32
    return %arg0, %c0_i32 : i32, i32
  }
}

</mosaic_0001>

<bundles_post_ra>
// kernel: tpu_custom_call.1
= control target key start
LH: loop header
LB: loop body
LE: loop exit
PB: predicated region body
PF: predicated region fallthrough
CT: control target
= control target key end

     0   :  { %11 = vsyncpa [#allocation3], 0  ;;  %s410_s0 = inlined_call_operand.hbm [shape: f32[8,32], index: 0, kind: input, shape index: {}]   ;;  %s411_s1 = inlined_call_operand.hbm [shape: f32[32,128], index: 1, kind: input, shape index: {}]   ;;  %s412_s2 = inlined_call_operand.vmem [shape: f32[1,128], index: 2, kind: input, shape index: {}]   ;;  %s413_s3 = inlined_call_operand.hbm [shape: f32[8,128], index: 3, kind: output, shape index: {0}]   ;;  %s414_s4 = inlined_call_operand.vmem [shape: s32[8,2], index: 4, kind: output, shape index: {1}]   ;;  %s415_s5 = inlined_call_operand.vmem [shape: f32[8,2], index: 5, kind: output, shape index: {2}]  }
   0x1   :  { %12 = vsyncpa [#allocation6], 0 }
   0x2   :  { %13 = vsyncpa [#allocation4], 0  ;;  %s316_s18 = smov [#allocation2]   ;;  %s317_s20 = smov [#allocation5]  }
   0x3   :  { %s20_s19 = sshll.u32 %s316_s18, 4  ;;  %s29_s21 = sshll.u32 %s317_s20, 4  ;;  %s21_s19 = int_to_ptr.vmem [resolvable:$true] %s20_s19  ;;  %s354_s21 = int_to_ptr.vmem [resolvable:$true] %s29_s21 }
   0x4   :  { %s244_s24 = scalar_lea.hbm %s410_s0, 128 }
   0x5   :  { %p245_p0 = scmp.ne.s32.totalorder %s410_s0, %s244_s24  ;;  %p248_p1 = scmp.lt.u32.totalorder %s244_s24, %s410_s0 }
   0x7   :  { %p250_p2 = pnand %p248_p1, %p245_p0 }
   0x9   :  { %253 = shalt.err (!%p250_p2)
}
   0xa   :  { %s254_s29 = scalar_lea.vmem %s21_s19, 128  ;;  %p259_p4 = scmp.lt.s32.totalorder %s21_s19, %s21_s19 }
   0xb   :  { %p255_p3 = scmp.ne.s32.totalorder %s21_s19, %s254_s29  ;;  %p260_p5 = scmp.lt.s32.totalorder %s254_s29, %s254_s29 }
   0xd   :  { %p261_p6 = por %p260_p5, %p259_p4 }
   0xf   :  { %p262_p7 = pnand %p261_p6, %p255_p3 }
  0x11   :  { %265 = shalt.err (!%p262_p7)
}
  0x12   :  { %23 = dma.hbm_to_vmem [thread:$0]  %s410_s0, 128, %s21_s19, [#allocation3]  }
  0x13   :  { %s266_s9 = scalar_lea.hbm %s411_s1, 512 }
  0x14   :  { %p267_p8 = scmp.ne.s32.totalorder %s411_s1, %s266_s9  ;;  %p270_p9 = scmp.lt.u32.totalorder %s266_s9, %s411_s1 }
  0x16   :  { %p272_p10 = pnand %p270_p9, %p267_p8 }
  0x18   :  { %275 = shalt.err (!%p272_p10)
}
  0x19   :  { %s276_s14 = scalar_lea.vmem %s354_s21, 512  ;;  %p281_p12 = scmp.lt.s32.totalorder %s354_s21, %s354_s21 }
  0x1a   :  { %p277_p11 = scmp.ne.s32.totalorder %s354_s21, %s276_s14  ;;  %p282_p13 = scmp.lt.s32.totalorder %s276_s14, %s276_s14 }
  0x1c   :  { %p283_p0 = por %p282_p13, %p281_p12 }
  0x1e   :  { %p284_p1 = pnand %p283_p0, %p277_p11 }
  0x20   :  { %287 = shalt.err (!%p284_p1)
}
  0x21   :  { %s318_s0 = smov 128   ;;  %s319_s15 = smov 8  }
  0x22   :  { %35 = dma.hbm_to_vmem [thread:$0]  %s411_s1, 512, %s354_s21, [#allocation6], %s318_s0, %s318_s0, %s319_s15  }
  0x23   :  { %310 = dma.done.wait [#allocation3], 128  }
  0x24   :  { %311 = vsyncadd [#allocation3], 4294967168 }
  0x25   :  { %312 = dma.done.wait [#allocation6], 512  }
  0x26   :  { %313 = vsyncadd [#allocation6], 4294966784  ;;  %v320_v0 = vmov 0.0|0.0   ;;  %vm321_vm0 = vmmov 0   ;;  %v322_v1 = vmov 0.0   ;;  %v45_v2 = vld [vmem:[#allocation5] sm:$0xff]  ;;  %v131_v13 = vlaneseq }
  0x27   :  { %226 = vmatprep.subr.bf16.mxu0 %v320_v0  ;;  %223 = vmatprep.mubr.msk.f32.mxu0 %vm321_vm0, %v322_v1  ;;  %v46_v3 = vld [vmem:[#allocation5 + $0x8] sm:$0xff]  ;;  %v47_v4 = vld [vmem:[#allocation5 + $0x10] sm:$0xff]  ;;  %v48_v6 = vld [vmem:[#allocation5 + $0x18] sm:$0xff]  ;;  %vm56_vm1 = vcmask 261120   ;;  %vm178_vm6 = vcmask 7168   ;;  %vm181_vm7 = vcmask 15360  }
  0x28   :  { %v227_v5 = vpack.c.bf16 %v46_v3, %v45_v2  ;;  %v230_v7 = vpack.c.bf16 %v48_v6, %v47_v4  ;;  %v44_v8 = vld [vmem:[#allocation2] sm:$0xff]  ;;  %v208_v9 = vld [vmem:[%s412_s2] ss:$0 sm:$0xff]  ;;  %v132_v14 = vand.u32 127, %v131_v13  ;;  %s323_s20 = smov [#allocation7]  }
  0x29   :  { %s190_s21 = sshll.u32 %s323_s20, 4  ;;  %s191_s21 = int_to_ptr.vmem [resolvable:$true] %s190_s21 }
  0x2a   :  { %228 = vmatpush3.bf16.msra.mxu0 %v227_v5  ;;  %s288_s22 = scalar_lea.vmem %s191_s21, 128  ;;  %p293_p3 = scmp.lt.s32.totalorder %s191_s21, %s191_s21 }
  0x2b   :  { %229 = vmatprep.subr.bf16.mxu0 %v320_v0  ;;  %p289_p2 = scmp.ne.s32.totalorder %s191_s21, %s288_s22  ;;  %p294_p4 = scmp.lt.s32.totalorder %s288_s22, %s288_s22 }
  0x2d   :  { %p295_p5 = por %p294_p4, %p293_p3 }
  0x2e   :  { %231 = vmatpush3.bf16.msra.mxu0 %v230_v7 }
  0x2f   :  { %p296_p6 = pnand %p295_p5, %p289_p2 }
  0x31   :  { %224 = vmatmul.mubr.msk.f32.vlgmr.msra.gmra.mrb[0].mxu0 %vm56_vm1, %v44_v8 }
 0x104   :  { %v126_v10 = vpop.f32.mrb[0].mxu0 }
 0x105   :  { %v127_v11 = vadd.f32 %v208_v9, %v126_v10  ;;  %v225_v12 = vpop.f32.mrb[1].mxu0 }
 0x107   :  { %130 = vst [vmem:[#allocation7] sm:$0xff] %v127_v11  ;;  %133 = vmax.xlane.f32.xlu0 %v127_v11 }
 0x194   :  { %v134_v15 = vpop.xlane.xlu0 %133 }
 0x195   :  { %vm135_vm2 = vcmp.eq.f32.partialorder %v127_v11, %v134_v15 }
 0x196   :  { %v136_v16 = vsel %vm135_vm2, %v132_v14, 128 }
 0x197   :  { %v138_v17 = vshra.s32 %v136_v16, 16  ;;  %v137_v19 = vand.u32 65535, %v136_v16 }
 0x199   :  { %v140_v18 = vcvt.s32.f32 %v138_v17  ;;  %v139_v21 = vcvt.s32.f32 %v137_v19 }
 0x19b   :  { %141 = vmin.xlane.f32.xlu0 %v140_v18 }
 0x228   :  { %v142_v20 = vpop.xlane.xlu0 %141 }
 0x229   :  { %vm143_vm3 = vcmp.eq.f32.partialorder %v140_v18, %v142_v20  ;;  %v148_v23 = vcvt.f32.s32 %v142_v20 }
 0x22a   :  { %v144_v22 = vsel %vm143_vm3, %v139_v21, inf }
 0x22b   :  { %145 = vmin.xlane.f32.xlu1 %v144_v22  ;;  %v149_v25 = vshll.u32 %v148_v23, 16 }
 0x2b8   :  { %v146_v24 = vpop.xlane.xlu1 %145 }
 0x2b9   :  { %v147_v26 = vcvt.f32.s32 %v146_v24 }
 0x2bb   :  { %v150_v27 = vadd.s32 %v149_v25, %v147_v26 }
 0x2bd   :  { %vm151_vm4 = vcmp.eq.s32.totalorder %v132_v14, %v150_v27 }
 0x2be   :  { %v152_v28 = vsel %vm151_vm4, -1e+30, %v127_v11 }
 0x2bf   :  { %153 = vmax.xlane.f32.xlu1 %v152_v28 }
 0x34c   :  { %v154_v29 = vpop.xlane.xlu1 %153 }
 0x34d   :  { %vm155_vm5 = vcmp.eq.f32.partialorder %v152_v28, %v154_v29  ;;  %v171_v30 = vsub.f32 %v154_v29, %v134_v15 }
 0x34e   :  { %v156_v31 = vsel %vm155_vm5, %v132_v14, 128 }
 0x34f   :  { %v172_v32 = vmul.f32 1.442695, %v171_v30  ;;  %v158_v33 = vshra.s32 %v156_v31, 16  ;;  %v157_v40 = vand.u32 65535, %v156_v31 }
 0x351   :  { %240 = vpow2.f32 %v172_v32  ;;  %v160_v34 = vcvt.s32.f32 %v158_v33  ;;  %v159_v42 = vcvt.s32.f32 %v157_v40 }
 0x353   :  { %161 = vmin.xlane.f32.xlu0 %v160_v34 }
 0x35b   :  { %v241_v35 = vpop.eup %240 }
 0x35c   :  { %v174_v36 = vadd.f32 1.0, %v241_v35 }
 0x35e   :  { %242 = vrcp.f32 %v174_v36 }
 0x368   :  { %v243_v37 = vpop.eup %242 }
 0x369   :  { %v177_v38 = vmul.f32 %v243_v37, %v241_v35 }
 0x36b   :  { %v180_v39 = vsel %vm178_vm6, %v243_v37, %v177_v38 }
 0x36c   :  { %183 = vst.msk [vmem:[%s415_s5] sm:$0xff] %vm181_vm7, %v180_v39 }
 0x3e0   :  { %v162_v41 = vpop.xlane.xlu0 %161 }
 0x3e1   :  { %vm163_vm8 = vcmp.eq.f32.partialorder %v160_v34, %v162_v41 }
 0x3e2   :  { %v164_v43 = vsel %vm163_vm8, %v159_v42, inf }
 0x3e3   :  { %165 = vmin.xlane.f32.xlu1 %v164_v43 }
 0x3e4   :  { %299 = shalt.err (!%p296_p6)
}
 0x3e5   :  { %s300_s5 = scalar_lea.hbm %s413_s3, 128 }
 0x3e6   :  { %p301_p7 = scmp.ne.s32.totalorder %s413_s3, %s300_s5  ;;  %p304_p8 = scmp.lt.u32.totalorder %s300_s5, %s413_s3 }
 0x3e8   :  { %p306_p9 = pnand %p304_p8, %p301_p7 }
 0x3ea   :  { %309 = shalt.err (!%p306_p9)
}
 0x3eb   :  { %193 = dma.vmem_to_hbm [thread:$0]  %s191_s21, 128, %s413_s3, [#allocation4]   ;;  %v168_v44 = vcvt.f32.s32 %v162_v41 }
 0x3ed   :  { %v169_v46 = vshll.u32 %v168_v44, 16 }
 0x470   :  { %v166_v45 = vpop.xlane.xlu1 %165 }
 0x471   :  { %v167_v47 = vcvt.f32.s32 %v166_v45 }
 0x473   :  { %v170_v48 = vadd.s32 %v169_v46, %v167_v47 }
 0x475   :  { %v179_v49 = vsel %vm178_vm6, %v150_v27, %v170_v48 }
 0x476   :  { %182 = vst.msk [vmem:[%s414_s4] sm:$0xff] %vm181_vm7, %v179_v49 }
 0x477   :  { %314 = dma.done.wait [#allocation4], 128  }
 0x478   :  { %315 = vsyncadd [#allocation4], 4294967168 }
 0x479   :  { %205 = vsyncpa [#allocation3], 1 }
 0x47a   :  { %206 = vsyncpa [#allocation6], 1 }
 0x47b   :  { %207 = vsyncpa [#allocation4], 1 }

</bundles_post_ra>
